<compile_context>
chip_gen: v5e
topology: v5e:2x2
jax: 0.10.0
libtpu: 0.0.40
codegen_flags: <defaults>
</compile_context>

<pallas_src>
import functools
import math

import jax
import jax.numpy as jnp
from jax.experimental import pallas as pl
from jax.experimental.pallas import tpu as pltpu


# ------------------------- tiling helpers -------------------------

def _pick_tile(dim, target, align):
    """Largest tile <= target that divides dim and is `align`-granular, else full dim."""
    if dim <= target:
        return dim
    t = (target // align) * align
    while t >= align:
        if dim % t == 0:
            return t
        t -= align
    return dim


def _pick_head_block(n_heads, head_dim):
    """Smallest head-block count making the lane width a multiple of 128."""
    for hb in range(1, n_heads + 1):
        if n_heads % hb == 0 and (hb * head_dim) % 128 == 0:
            return hb
    return n_heads


# ------------------------- Pallas kernels -------------------------

def _linear_kernel(x_ref, w_ref, b_ref, o_ref, acc_ref, *, activation):
    """Tiled matmul with bias + optional activation epilogue (bf16 in, f32 acc)."""
    @pl.when(pl.program_id(2) == 0)
    def _():
        acc_ref[...] = jnp.zeros_like(acc_ref)

    acc_ref[...] += jnp.dot(x_ref[...], w_ref[...],
                            preferred_element_type=jnp.float32)

    @pl.when(pl.program_id(2) == pl.num_programs(2) - 1)
    def _():
        y = acc_ref[...] + b_ref[...].astype(jnp.float32)
        if activation == "gelu":
            # TODO(synk): HF BERT uses exact erf-GELU; tanh approximation used
            # (f32 math, per v5e guidance), numerically very close.
            c = 0.7978845608028654
            y = 0.5 * y * (1.0 + jnp.tanh(c * (y + 0.044715 * y * y * y)))
        elif activation == "tanh":
            y = jnp.tanh(y)
        o_ref[...] = y.astype(o_ref.dtype)


def linear(x, w, b, activation=None, out_dtype=jnp.bfloat16,
           tm=256, tn=256, tk=512):
    """x:(M,K) @ w:(K,N) + b, tiled + pipelined, bf16 MXU inputs, f32 accumulate."""
    M, K = x.shape
    N = w.shape[1]
    tm = _pick_tile(M, tm, 8)
    tn = _pick_tile(N, tn, 128)
    tk = _pick_tile(K, tk, 128)
    return pl.pallas_call(
        functools.partial(_linear_kernel, activation=activation),
        out_shape=jax.ShapeDtypeStruct((M, N), out_dtype),
        grid=(M // tm, N // tn, K // tk),
        in_specs=[pl.BlockSpec((tm, tk), lambda i, j, k: (i, k)),
                  pl.BlockSpec((tk, tn), lambda i, j, k: (k, j)),
                  pl.BlockSpec((1, tn), lambda i, j, k: (0, j))],
        out_specs=pl.BlockSpec((tm, tn), lambda i, j, k: (i, j)),
        scratch_shapes=[pltpu.VMEM((tm, tn), jnp.float32)],
        compiler_params=pltpu.CompilerParams(
            dimension_semantics=("parallel", "parallel", "arbitrary")),
    )(x.astype(jnp.bfloat16), w.astype(jnp.bfloat16),
      b.reshape(1, N).astype(jnp.bfloat16))


def _linear_add_ln_kernel(x_ref, w_ref, b_ref, r_ref, g_ref, bt_ref,
                          o_ref, acc_ref, *, eps):
    """Tiled matmul whose epilogue fuses bias + residual add + LayerNorm."""
    @pl.when(pl.program_id(1) == 0)
    def _():
        acc_ref[...] = jnp.zeros_like(acc_ref)

    acc_ref[...] += jnp.dot(x_ref[...], w_ref[...],
                            preferred_element_type=jnp.float32)

    @pl.when(pl.program_id(1) == pl.num_programs(1) - 1)
    def _():
        y = (acc_ref[...] + b_ref[...].astype(jnp.float32)
             + r_ref[...].astype(jnp.float32))
        mu = jnp.mean(y, axis=-1, keepdims=True)
        yc = y - mu
        var = jnp.mean(yc * yc, axis=-1, keepdims=True)
        o_ref[...] = (yc * jax.lax.rsqrt(var + eps) * g_ref[...]
                      + bt_ref[...]).astype(o_ref.dtype)


def linear_add_layernorm(x, w, b, residual, gamma, beta, eps=1e-12,
                         out_dtype=jnp.bfloat16, tm=256, tk=512):
    """(x @ w + b + residual) -> LayerNorm, fused.  N (=hidden) kept un-tiled."""
    M, K = x.shape
    N = w.shape[1]
    tm = _pick_tile(M, tm, 8)
    tk = _pick_tile(K, tk, 128)
    return pl.pallas_call(
        functools.partial(_linear_add_ln_kernel, eps=eps),
        out_shape=jax.ShapeDtypeStruct((M, N), out_dtype),
        grid=(M // tm, K // tk),
        in_specs=[pl.BlockSpec((tm, tk), lambda i, k: (i, k)),
                  pl.BlockSpec((tk, N), lambda i, k: (k, 0)),
                  pl.BlockSpec((1, N), lambda i, k: (0, 0)),
                  pl.BlockSpec((tm, N), lambda i, k: (i, 0)),
                  pl.BlockSpec((1, N), lambda i, k: (0, 0)),
                  pl.BlockSpec((1, N), lambda i, k: (0, 0))],
        out_specs=pl.BlockSpec((tm, N), lambda i, k: (i, 0)),
        scratch_shapes=[pltpu.VMEM((tm, N), jnp.float32)],
        compiler_params=pltpu.CompilerParams(
            dimension_semantics=("parallel", "arbitrary")),
    )(x.astype(jnp.bfloat16), w.astype(jnp.bfloat16),
      b.reshape(1, N).astype(jnp.bfloat16), residual.astype(jnp.bfloat16),
      gamma.reshape(1, N).astype(jnp.float32),
      beta.reshape(1, N).astype(jnp.float32))


def _ln_kernel(x_ref, g_ref, b_ref, o_ref, *, eps):
    x = x_ref[...].astype(jnp.float32)
    mu = jnp.mean(x, axis=-1, keepdims=True)
    xc = x - mu
    var = jnp.mean(xc * xc, axis=-1, keepdims=True)
    o_ref[...] = (xc * jax.lax.rsqrt(var + eps) * g_ref[...]
                  + b_ref[...]).astype(o_ref.dtype)


def layernorm(x, gamma, beta, eps=1e-12, out_dtype=jnp.bfloat16, tm=512):
    """Residual-free LayerNorm (embedding LN), tiled over rows."""
    M, H = x.shape
    tm = _pick_tile(M, tm, 8)
    return pl.pallas_call(
        functools.partial(_ln_kernel, eps=eps),
        out_shape=jax.ShapeDtypeStruct((M, H), out_dtype),
        grid=(M // tm,),
        in_specs=[pl.BlockSpec((tm, H), lambda i: (i, 0)),
                  pl.BlockSpec((1, H), lambda i: (0, 0)),
                  pl.BlockSpec((1, H), lambda i: (0, 0))],
        out_specs=pl.BlockSpec((tm, H), lambda i: (i, 0)),
        compiler_params=pltpu.CompilerParams(dimension_semantics=("parallel",)),
    )(x, gamma.reshape(1, H).astype(jnp.float32),
      beta.reshape(1, H).astype(jnp.float32))


def _attn_kernel(q_ref, k_ref, v_ref, m_ref, o_ref, *, scale, hb, Dh):
    """Multi-head softmax attention for one (batch, head-block) grid step."""
    q_all = q_ref[...]                    # (S, hb*Dh) bf16
    k_all = k_ref[...]
    v_all = v_ref[...]
    m = m_ref[0]                          # (1, S) additive mask, broadcast over queries
    outs = []
    for j in range(hb):                   # static unroll over heads in the block
        q = q_all[:, j * Dh:(j + 1) * Dh]
        k = k_all[:, j * Dh:(j + 1) * Dh]
        v = v_all[:, j * Dh:(j + 1) * Dh]
        s = jax.lax.dot_general(q, k, (((1,), (1,)), ((), ())),
                                preferred_element_type=jnp.float32)
        s = s * scale + m
        s = s - jnp.max(s, axis=-1, keepdims=True)
        p = jnp.exp(s)
        p = p * pl.reciprocal(jnp.sum(p, axis=-1, keepdims=True), approx=True)
        outs.append(jnp.dot(p.astype(v.dtype), v,
                            preferred_element_type=jnp.float32))
    o_ref[...] = jnp.concatenate(outs, axis=1).astype(o_ref.dtype)  # lane-dense store


def attention(qkv, mask, scale, B, S, nH, Dh):
    """qkv: (B*S, 3H) fused projection output; mask: (B, 1, S) additive.

    Head slices of Q/K/V are read straight from the fused QKV activation via
    the BlockSpec index_maps (no split/merge transposes, no mask replication).
    """
    H = nH * Dh
    hb = _pick_head_block(nH, Dh)
    nHB = nH // hb
    M = B * S
    bw = hb * Dh
    return pl.pallas_call(
        functools.partial(_attn_kernel, scale=scale, hb=hb, Dh=Dh),
        out_shape=jax.ShapeDtypeStruct((M, H), jnp.bfloat16),
        grid=(B, nHB),
        in_specs=[pl.BlockSpec((S, bw), lambda b, h: (b, h)),              # Q slice
                  pl.BlockSpec((S, bw), lambda b, h: (b, nHB + h)),        # K slice
                  pl.BlockSpec((S, bw), lambda b, h: (b, 2 * nHB + h)),    # V slice
                  pl.BlockSpec((1, 1, S), lambda b, h: (b, 0, 0))],        # per-batch mask
        out_specs=pl.BlockSpec((S, bw), lambda b, h: (b, h)),
        compiler_params=pltpu.CompilerParams(
            dimension_semantics=("parallel", "parallel")),
    )(qkv, qkv, qkv, mask)


# ------------------------- model (glue in plain JAX) -------------------------

def encoder_layer(x2d, p, B, S, nH, Dh, mask):
    qkv = linear(x2d, p["wqkv"], p["bqkv"])                      # fused Q/K/V projection
    ctx = attention(qkv, mask, 1.0 / math.sqrt(Dh), B, S, nH, Dh)
    x2d = linear_add_layernorm(ctx, p["wo"], p["bo"], x2d, p["ln1_g"], p["ln1_b"])
    ffn = linear(x2d, p["w1"], p["b1"], activation="gelu")
    x2d = linear_add_layernorm(ffn, p["w2"], p["b2"], x2d, p["ln2_g"], p["ln2_b"])
    return x2d


def bert_classifier_forward(params, input_ids, attention_mask, token_type_ids):
    """Equivalent of BERT.forward(X): bert(**X) -> dropout(res[1]) -> linear."""
    B, S = input_ids.shape
    H = params["word_emb"].shape[1]
    nH = params["num_heads"]
    Dh = H // nH

    # Embedding gathers (glue) + residual-free LayerNorm (kernel).
    emb = (params["word_emb"][input_ids]
           + params["pos_emb"][jnp.arange(S)][None, :, :]
           + params["type_emb"][token_type_ids])
    x2d = layernorm(emb.reshape(B * S, H).astype(jnp.float32),
                    params["emb_ln_g"], params["emb_ln_b"])

    # Extended additive attention mask, kept at (B, 1, S) — no per-head copies.
    mask = ((1.0 - attention_mask.astype(jnp.float32)) * -10000.0).reshape(B, 1, S)

    for lp in params["layers"]:
        x2d = encoder_layer(x2d, lp, B, S, nH, Dh, mask)

    seq = x2d.reshape(B, S, H)
    cls = seq[:, 0, :]                                           # [CLS] token
    pooled = linear(cls, params["pool_w"], params["pool_b"], activation="tanh")

    # nn.Dropout(0.5): inference/eval semantics -> identity.
    # Classifier head: pad N to a 128-lane multiple so stores stay lane-dense.
    ncls = params["cls_w"].shape[1]
    npad = ((ncls + 127) // 128) * 128
    cls_w = jnp.pad(params["cls_w"], ((0, 0), (0, npad - ncls)))
    cls_b = jnp.pad(params["cls_b"], ((0, npad - ncls),))
    logits = linear(pooled, cls_w, cls_b, out_dtype=jnp.float32)[:, :ncls]
    return logits


def make_params(key, vocab, max_pos, H, nH, inter, n_layers, n_classes):
    keys = iter(jax.random.split(key, 16 + 8 * n_layers))

    def w(shape, scale=0.02):
        return (scale * jax.random.normal(next(keys), shape)).astype(jnp.float32)

    params = {
        "num_heads": nH,
        "word_emb": w((vocab, H)),
        "pos_emb": w((max_pos, H)),
        "type_emb": w((2, H)),
        "emb_ln_g": jnp.ones((H,), jnp.float32),
        "emb_ln_b": jnp.zeros((H,), jnp.float32),
        "pool_w": w((H, H)), "pool_b": jnp.zeros((H,), jnp.float32),
        "cls_w": w((H, n_classes)), "cls_b": jnp.zeros((n_classes,), jnp.float32),
        "layers": [],
    }
    for _ in range(n_layers):
        params["layers"].append({
            "wqkv": w((H, 3 * H)), "bqkv": jnp.zeros((3 * H,), jnp.float32),
            "wo": w((H, H)), "bo": jnp.zeros((H,), jnp.float32),
            "ln1_g": jnp.ones((H,), jnp.float32), "ln1_b": jnp.zeros((H,), jnp.float32),
            "w1": w((H, inter)), "b1": jnp.zeros((inter,), jnp.float32),
            "w2": w((inter, H)), "b2": jnp.zeros((H,), jnp.float32),
            "ln2_g": jnp.ones((H,), jnp.float32), "ln2_b": jnp.zeros((H,), jnp.float32),
        })
    return params


if __name__ == "__main__":
    B, S = 2, 8
    vocab, max_pos, H, nH, inter, n_layers, n_classes = 32, 16, 128, 2, 256, 2, 3

    key = jax.random.PRNGKey(0)
    pkey, ikey = jax.random.split(key)
    params = make_params(pkey, vocab, max_pos, H, nH, inter, n_layers, n_classes)

    # X = {"input_ids", "attention_mask", "token_type_ids"}
    input_ids = jax.random.randint(ikey, (B, S), 0, vocab, dtype=jnp.int32)
    attention_mask = jnp.ones((B, S), jnp.int32).at[1, 6:].set(0)  # padded tail in batch 1
    token_type_ids = jnp.zeros((B, S), jnp.int32)

    logits = bert_classifier_forward(params, input_ids, attention_mask, token_type_ids)
    logits = jax.block_until_ready(logits)
    assert logits.shape == (B, n_classes) and logits.dtype == jnp.float32
    assert bool(jnp.all(jnp.isfinite(logits)))
    print("KERNEL_OK")
</pallas_src>

<mosaic_0001>
module attributes {stable_mosaic.version = 11 : i64} {
  func.func @_ln_kernel(%arg0: i32, %arg1: memref<16x128xf32, #tpu.memory_space<vmem>>, %arg2: memref<1x128xf32, #tpu.memory_space<vmem>>, %arg3: memref<1x128xf32, #tpu.memory_space<vmem>>, %arg4: memref<16x128xbf16, #tpu.memory_space<vmem>>) attributes {dimension_semantics = [#tpu.dimension_semantics<parallel>], iteration_bounds = array<i64: 1>, scalar_prefetch = 0 : i64, scratch_operands = 0 : i64, tpu.core_type = #tpu.core_type<tc>, window_params = [{transform_indices = @transform_0, window_bounds = array<i64: 16, 128>}, {pipeline_mode = #tpu.pipeline_mode<synchronous>, transform_indices = @transform_1, window_bounds = array<i64: 1, 128>}, {pipeline_mode = #tpu.pipeline_mode<synchronous>, transform_indices = @transform_2, window_bounds = array<i64: 1, 128>}, {transform_indices = @transform_3, window_bounds = array<i64: 16, 128>}]} {
    %c0 = arith.constant 0 : index
    %c0_0 = arith.constant 0 : index
    %0 = vector.load %arg1[%c0, %c0_0] : memref<16x128xf32, #tpu.memory_space<vmem>>, vector<16x128xf32>
    %cst = arith.constant dense<0.000000e+00> : vector<16xf32>
    %1 = vector.multi_reduction <add>, %0, %cst [1] : vector<16x128xf32> to vector<16xf32>
    %2 = vector.shape_cast %1 : vector<16xf32> to vector<16x1xf32>
    %cst_1 = arith.constant 1.280000e+02 : f32
    %3 = vector.broadcast %cst_1 : f32 to vector<16x1xf32>
    %4 = arith.divf %2, %3 : vector<16x1xf32>
    %5 = vector.broadcast %4 : vector<16x1xf32> to vector<16x128xf32>
    %6 = arith.subf %0, %5 : vector<16x128xf32>
    %7 = arith.mulf %6, %6 : vector<16x128xf32>
    %cst_2 = arith.constant dense<0.000000e+00> : vector<16xf32>
    %8 = vector.multi_reduction <add>, %7, %cst_2 [1] : vector<16x128xf32> to vector<16xf32>
    %9 = vector.shape_cast %8 : vector<16xf32> to vector<16x1xf32>
    %cst_3 = arith.constant 1.280000e+02 : f32
    %10 = vector.broadcast %cst_3 : f32 to vector<16x1xf32>
    %11 = arith.divf %9, %10 : vector<16x1xf32>
    %cst_4 = arith.constant 9.99999996E-13 : f32
    %12 = vector.broadcast %cst_4 : f32 to vector<16x1xf32>
    %13 = arith.addf %11, %12 : vector<16x1xf32>
    %14 = math.rsqrt %13 : vector<16x1xf32>
    %15 = vector.broadcast %14 : vector<16x1xf32> to vector<16x128xf32>
    %16 = arith.mulf %6, %15 : vector<16x128xf32>
    %c0_5 = arith.constant 0 : index
    %c0_6 = arith.constant 0 : index
    %17 = vector.load %arg2[%c0_5, %c0_6] : memref<1x128xf32, #tpu.memory_space<vmem>>, vector<1x128xf32>
    %18 = vector.broadcast %17 : vector<1x128xf32> to vector<16x128xf32>
    %19 = arith.mulf %16, %18 : vector<16x128xf32>
    %c0_7 = arith.constant 0 : index
    %c0_8 = arith.constant 0 : index
    %20 = vector.load %arg3[%c0_7, %c0_8] : memref<1x128xf32, #tpu.memory_space<vmem>>, vector<1x128xf32>
    %21 = vector.broadcast %20 : vector<1x128xf32> to vector<16x128xf32>
    %22 = arith.addf %19, %21 : vector<16x128xf32>
    %23 = arith.truncf %22 : vector<16x128xf32> to vector<16x128xbf16>
    %c0_9 = arith.constant 0 : index
    %c0_10 = arith.constant 0 : index
    %24 = vector.load %arg4[%c0_9, %c0_10] : memref<16x128xbf16, #tpu.memory_space<vmem>>, vector<16x128xbf16>
    tpu.vector_store %arg4[%c0_9, %c0_10], %23 {strides = array<i32>} : memref<16x128xbf16, #tpu.memory_space<vmem>>, vector<16x128xbf16>,
    return
  }
  func.func @transform_0(%arg0: i32) -> (i32, i32) {
    %c0_i32 = arith.constant 0 : i32
    %c0_i32_0 = arith.constant 0 : i32
    return %arg0, %c0_i32 : i32, i32
  }
  func.func @transform_1(%arg0: i32) -> (i32, i32) {
    %c0_i32 = arith.constant 0 : i32
    %c0_i32_0 = arith.constant 0 : i32
    %c0_i32_1 = arith.constant 0 : i32
    return %c0_i32, %c0_i32_0 : i32, i32
  }
  func.func @transform_2(%arg0: i32) -> (i32, i32) {
    %c0_i32 = arith.constant 0 : i32
    %c0_i32_0 = arith.constant 0 : i32
    %c0_i32_1 = arith.constant 0 : i32
    return %c0_i32, %c0_i32_0 : i32, i32
  }
  func.func @transform_3(%arg0: i32) -> (i32, i32) {
    %c0_i32 = arith.constant 0 : i32
    %c0_i32_0 = arith.constant 0 : i32
    return %arg0, %c0_i32 : i32, i32
  }
}

</mosaic_0001>

<bundles_post_ra>
// kernel: tpu_custom_call.1
= control target key start
LH: loop header
LB: loop body
LE: loop exit
PB: predicated region body
PF: predicated region fallthrough
CT: control target
= control target key end

     0   :  { %8 = vsyncpa [#allocation3], 0  ;;  %s269_s0 = inlined_call_operand.hbm [shape: f32[16,128], index: 0, kind: input, shape index: {}]   ;;  %s270_s1 = inlined_call_operand.hbm [shape: f32[1,128], index: 1, kind: input, shape index: {}]   ;;  %s271_s2 = inlined_call_operand.vmem [shape: f32[1,128], index: 2, kind: input, shape index: {}]   ;;  %s272_s3 = inlined_call_operand.hbm [shape: bf16[16,128], index: 3, kind: output, shape index: {}]  }
   0x1   :  { %9 = vsyncpa [#allocation6], 0 }
   0x2   :  { %10 = vsyncpa [#allocation4], 0  ;;  %s15_s14 = sshll.u32 %s269_s0, 4  ;;  %s229_s15 = smov [#allocation2]   ;;  %s16_s14 = int_to_ptr.hbm [resolvable:$true] %s15_s14 }
   0x3   :  { %s17_s16 = sshll.u32 %s229_s15, 4  ;;  %s29_s19 = sshll.u32 %s270_s1, 4  ;;  %s18_s16 = int_to_ptr.vmem [resolvable:$true] %s17_s16  ;;  %s30_s19 = int_to_ptr.hbm [resolvable:$true] %s29_s19 }
   0x4   :  { %s230_s20 = smov 128   ;;  %s231_s21 = smov 8  }
   0x5   :  { %23 = dma.hbm_to_vmem [thread:$0]  %s16_s14, 256, %s18_s16, [#allocation3], %s230_s20, %s230_s20, %s231_s21  }
   0x6   :  { %s232_s22 = smov [#allocation5]  }
   0x7   :  { %s31_s23 = sshll.u32 %s232_s22, 4  ;;  %s32_s23 = int_to_ptr.vmem [resolvable:$true] %s31_s23 }
   0x8   :  { %34 = dma.hbm_to_vmem [thread:$0]  %s30_s19, 16, %s32_s23, [#allocation6]  }
   0x9   :  { %223 = dma.done.wait [#allocation3], 256  }
   0xa   :  { %224 = vsyncadd [#allocation3], 4294967040 }
   0xb   :  { %225 = dma.done.wait [#allocation6], 16  }
   0xc   :  { %226 = vsyncadd [#allocation6], 4294967280  ;;  %v45_v0 = vld [vmem:[#allocation2] sm:$0xff]  ;;  %v46_v1 = vld [vmem:[#allocation2 + $0x8] sm:$0xff]  ;;  %v233_v2 = vmov 128.0   ;;  %s234_s24 = smov [#allocation7]  }
   0xd   :  { %47 = vadd.xlane.f32.xlu0 %v45_v0  ;;  %145 = vrcp.f32 %v233_v2  ;;  %v143_v35 = vld [vmem:[#allocation5] ss:$0 sm:$0xff]  ;;  %v144_v41 = vld [vmem:[%s271_s2] ss:$0 sm:$0xff]  ;;  %s114_s25 = sshll.u32 %s234_s24, 4  ;;  %s116_s28 = sshll.u32 %s272_s3, 4  ;;  %s115_s25 = int_to_ptr.vmem [resolvable:$true] %s114_s25  ;;  %s117_s28 = int_to_ptr.hbm [resolvable:$true] %s116_s28 }
   0xe   :  { %s235_s29 = smov 64   ;;  %s236_s30 = smov 4  }
  0x13   :  { %v146_v3 = vpop.eup %145 }
  0x14   :  { %v52_v4 = vmul.f32 128.0, %v146_v3  ;;  %vm56_vm0 = vweird.f32 %v146_v3 }
  0x15   :  { %49 = vadd.xlane.f32.xlu0 %v46_v1 }
  0x16   :  { %v53_v5 = vsub.f32 1.0, %v52_v4 }
  0x18   :  { %v54_v6 = vmul.f32 %v146_v3, %v53_v5 }
  0x1a   :  { %v55_v7 = vadd.f32 %v146_v3, %v54_v6 }
  0x1c   :  { %v57_v8 = vsel %vm56_vm0, %v146_v3, %v55_v7 }
  0x80   :  { %v48_v9 = vpop.xlane.xlu0 %47 }
  0x81   :  { %v58_v10 = vmul.f32 %v57_v8, %v48_v9 }
  0x83   :  { %v60_v11 = vsub.f32 %v45_v0, %v58_v10 }
  0x85   :  { %v62_v12 = vmul.f32 %v60_v11, %v60_v11 }
  0x87   :  { %64 = vadd.xlane.f32.xlu1 %v62_v12 }
  0x88   :  { %v50_v13 = vpop.xlane.xlu0 %49 }
  0x89   :  { %v59_v14 = vmul.f32 %v57_v8, %v50_v13 }
  0x8b   :  { %v61_v15 = vsub.f32 %v46_v1, %v59_v14 }
  0x8d   :  { %v63_v16 = vmul.f32 %v61_v15, %v61_v15 }
  0x8f   :  { %66 = vadd.xlane.f32.xlu1 %v63_v16 }
  0xfa   :  { %v65_v17 = vpop.xlane.xlu1 %64 }
  0xfb   :  { %v68_v18 = vmul.f32 %v65_v17, %v57_v8 }
  0xfd   :  { %v70_v19 = vadd.f32 1e-12, %v68_v18 }
  0xff   :  { %147 = vrsqrt.f32 %v70_v19  ;;  %vm78_vm2 = vweird.f32 %v70_v19 }
 0x102   :  { %v67_v20 = vpop.xlane.xlu1 %66 }
 0x103   :  { %v69_v21 = vmul.f32 %v67_v20, %v57_v8 }
 0x105   :  { %v148_v22 = vpop.eup %147  ;;  %v71_v23 = vadd.f32 1e-12, %v69_v21 }
 0x106   :  { %v73_v24 = vmul.f32 %v148_v22, %v70_v19  ;;  %vm79_vm1 = vweird.f32 %v148_v22 }
 0x107   :  { %149 = vrsqrt.f32 %v71_v23  ;;  %vm80_vm3 = vmor %vm78_vm2, %vm79_vm1  ;;  %vm88_vm5 = vweird.f32 %v71_v23 }
 0x108   :  { %v74_v25 = vmul.f32 %v148_v22, %v73_v24 }
 0x10a   :  { %v75_v26 = vmul.f32 0.5, %v74_v25 }
 0x10c   :  { %v76_v27 = vsub.f32 1.5, %v75_v26 }
 0x10d   :  { %v150_v28 = vpop.eup %149 }
 0x10e   :  { %v77_v29 = vmul.f32 %v148_v22, %v76_v27  ;;  %v83_v30 = vmul.f32 %v150_v28, %v71_v23  ;;  %vm89_vm4 = vweird.f32 %v150_v28 }
 0x10f   :  { %vm90_vm6 = vmor %vm88_vm5, %vm89_vm4 }
 0x110   :  { %v84_v31 = vmul.f32 %v150_v28, %v83_v30  ;;  %v81_v32 = vsel %vm80_vm3, %v148_v22, %v77_v29 }
 0x111   :  { %v92_v36 = vmul.f32 %v81_v32, %v60_v11 }
 0x112   :  { %v85_v33 = vmul.f32 0.5, %v84_v31 }
 0x113   :  { %v98_v39 = vmul.f32 %v143_v35, %v92_v36 }
 0x114   :  { %v86_v34 = vsub.f32 1.5, %v85_v33 }
 0x115   :  { %v104_v43 = vadd.f32 %v144_v41, %v98_v39 }
 0x116   :  { %v87_v37 = vmul.f32 %v150_v28, %v86_v34 }
 0x118   :  { %v91_v38 = vsel %vm90_vm6, %v150_v28, %v87_v37 }
 0x119   :  { %v93_v40 = vmul.f32 %v91_v38, %v61_v15 }
 0x11b   :  { %v99_v42 = vmul.f32 %v143_v35, %v93_v40 }
 0x11d   :  { %v105_v44 = vadd.f32 %v144_v41, %v99_v42 }
 0x11f   :  { %v133_v45 = vpack.c.bf16 %v105_v44, %v104_v43 }
 0x121   :  { %134 = vst [vmem:[#allocation7] sm:$0xff] %v133_v45  }
 0x122   :  { %122 = dma.vmem_to_hbm [thread:$0]  %s115_s25, 128, %s117_s28, [#allocation4], %s235_s29, %s235_s29, %s236_s30  }
 0x123   :  { %227 = dma.done.wait [#allocation4], 128  }
 0x124   :  { %228 = vsyncadd [#allocation4], 4294967168 }
 0x125   :  { %127 = vsyncpa [#allocation3], 1 }
 0x126   :  { %128 = vsyncpa [#allocation6], 1 }
 0x127   :  { %129 = vsyncpa [#allocation4], 1 }

</bundles_post_ra>
